<compile_context>
chip_gen: v6e
topology: v6e:2x2x1
jax: 0.10.0
libtpu: 0.0.40
codegen_flags: <defaults>
</compile_context>

<pallas_src>
import jax
import jax.numpy as jnp
from jax.experimental import pallas as pl
from jax.experimental.pallas import tpu as pltpu

INIT_VAL = 0.3  # deterministic init of the `variance` parameter (NeuS default-ish)

_COLS = 512            # lane-dense last dim (multiple of 128)
_MAX_BLOCK_ROWS = 1024  # up to (1024, 512) f32 = 2 MiB per output buffer


def _single_variance_kernel(var_ref, o_ref):
    # var_ref: (1,) scalar parameter in SMEM
    # o_ref:   (block_rows, _COLS) VMEM output tile (lane-dense)
    val = jnp.exp(var_ref[0] * 10.0)           # scalar; EUP, essentially free
    o_ref[...] = jnp.full(o_ref.shape, val, dtype=o_ref.dtype)


def single_variance_forward(x, variance, *, cols=_COLS, max_block_rows=_MAX_BLOCK_ROWS):
    """Pallas equivalent of SingleVarianceNetwork.forward(x).

    Returns an (N, 1) float32 array filled with exp(10 * variance), where
    N = x.shape[0]. Internally the kernel writes a lane-dense (rows, cols)
    slab; the wrapper reshapes/slices it back to (N, 1).
    """
    n = x.shape[0]

    # Rows needed to cover n elements at `cols` per row, rounded up to a
    # sublane multiple (8) so the BlockSpec is always legal.
    rows = max(8, pl.cdiv(n, cols))
    rows = ((rows + 7) // 8) * 8

    # Block rows: as large as allowed, but never larger than the slab.
    block_rows = min(max_block_rows, rows)
    # Pad rows up so the grid divides evenly (keeps index_map trivial).
    rows = pl.cdiv(rows, block_rows) * block_rows
    grid = (rows // block_rows,)

    slab = pl.pallas_call(
        _single_variance_kernel,
        out_shape=jax.ShapeDtypeStruct((rows, cols), jnp.float32),
        grid_spec=pltpu.PrefetchScalarGridSpec(
            num_scalar_prefetch=0,
            grid=grid,
            in_specs=[pl.BlockSpec(memory_space=pltpu.MemorySpace.SMEM)],
            out_specs=pl.BlockSpec((block_rows, cols), lambda i: (i, 0)),
        ),
        compiler_params=pltpu.CompilerParams(
            dimension_semantics=("parallel",),  # lets v7x split the fill across both TCs
        ),
    )(variance)

    # Row-major slab -> flat -> first n elements -> (n, 1). Reshape is free
    # metadata; the slice is a static-size copy in the wrapper (cheap).
    return slab.reshape(-1)[:n].reshape(n, 1)


def get_variance(variance):
    """Plain-JAX equivalent of SingleVarianceNetwork.get_variance()."""
    return jnp.clip(jnp.exp(variance * 10.0), 1e-06, 1e06)


if __name__ == "__main__":
    key = jax.random.PRNGKey(0)
    # deterministic parameter init (module: init_val * torch.ones(1))
    variance = jnp.full((1,), INIT_VAL, dtype=jnp.float32)

    # Case 1: small batch of 16 ray samples with 3-D positions; only len(x)=16 is used.
    x = jax.random.normal(key, (16, 3), dtype=jnp.float32)
    out = jax.block_until_ready(single_variance_forward(x, variance))
    expected = jnp.ones((x.shape[0], 1), jnp.float32) * jnp.exp(variance * 10.0)
    assert out.shape == (x.shape[0], 1), out.shape
    assert out.dtype == jnp.float32
    assert jnp.allclose(out, expected, rtol=1e-6, atol=1e-6)

    # Case 2: ragged batch size (not a multiple of 8) exercises the pad/slice path.
    x2 = jax.random.normal(key, (19, 3), dtype=jnp.float32)
    out2 = jax.block_until_ready(single_variance_forward(x2, variance))
    expected2 = jnp.ones((x2.shape[0], 1), jnp.float32) * jnp.exp(variance * 10.0)
    assert out2.shape == (x2.shape[0], 1), out2.shape
    assert jnp.allclose(out2, expected2, rtol=1e-6, atol=1e-6)

    print("KERNEL_OK")
</pallas_src>

<mosaic_0001>
module attributes {stable_mosaic.version = 11 : i64} {
  func.func @_single_variance_kernel(%arg0: i32, %arg1: memref<1xf32, #tpu.memory_space<smem>>, %arg2: memref<8x512xf32, #tpu.memory_space<vmem>>) attributes {dimension_semantics = [#tpu.dimension_semantics<parallel>], iteration_bounds = array<i64: 1>, scalar_prefetch = 0 : i64, scratch_operands = 0 : i64, tpu.core_type = #tpu.core_type<tc>, window_params = [{transform_indices = @transform_0, window_bounds = array<i64: 1>}, {transform_indices = @transform_1, window_bounds = array<i64: 8, 512>}]} {
    %c0 = arith.constant 0 : index
    %0 = memref.load %arg1[%c0] : memref<1xf32, #tpu.memory_space<smem>>
    %cst = arith.constant 1.000000e+01 : f32
    %1 = arith.mulf %0, %cst : f32
    %2 = math.exp %1 : f32
    %3 = vector.broadcast %2 : f32 to vector<8x512xf32>
    %c0_0 = arith.constant 0 : index
    %c0_1 = arith.constant 0 : index
    %4 = vector.load %arg2[%c0_0, %c0_1] : memref<8x512xf32, #tpu.memory_space<vmem>>, vector<8x512xf32>
    tpu.vector_store %arg2[%c0_0, %c0_1], %3 {strides = array<i32>} : memref<8x512xf32, #tpu.memory_space<vmem>>, vector<8x512xf32>,
    return
  }
  func.func @transform_0(%arg0: i32) -> i32 {
    %c0_i32 = arith.constant 0 : i32
    %c0_i32_0 = arith.constant 0 : i32
    return %c0_i32 : i32
  }
  func.func @transform_1(%arg0: i32) -> (i32, i32) {
    %c0_i32 = arith.constant 0 : i32
    %c0_i32_0 = arith.constant 0 : i32
    return %arg0, %c0_i32 : i32, i32
  }
}

</mosaic_0001>

<bundles_post_ra>
// kernel: tpu_custom_call.1
= control target key start
LH: loop header
LB: loop body
LE: loop exit
PB: predicated region body
PF: predicated region fallthrough
CT: control target
= control target key end

     0   :  { %s79_s0 = inlined_call_operand.<no memory space> [shape: f32[1], index: 0, kind: input, shape index: {}]   ;;  %s80_s1 = inlined_call_operand.hbm [shape: f32[8,512], index: 1, kind: output, shape index: {}]  }
   0x1   :  { %s11_s8 = smul.f32 10.0, %s79_s0 }
   0x2   :  { %7 = vsyncpa [#allocation4], 0  ;;  %s62_s9 = smov [#allocation3]  }
   0x3   :  { %v12_v0 = vstv %s11_s8  ;;  %s27_s10 = sshll.u32 %s62_s9, 4  ;;  %s28_s10 = int_to_ptr.vmem [resolvable:$true] %s27_s10 }
   0x4   :  { %v13_v1 = vmul.f32 1.442695, %v12_v0  ;;  %s40_s12 = scalar_lea.vmem %s28_s10, 512  ;;  %p45_p1 = scmp.lt.s32.totalorder %s28_s10, %s28_s10 }
   0x5   :  { %p41_p0 = scmp.ne.s32.totalorder %s28_s10, %s40_s12  ;;  %p46_p2 = scmp.lt.s32.totalorder %s40_s12, %s40_s12 }
   0x6   :  { %38 = vpow2.f32 %v13_v1 }
   0x7   :  { %p47_p3 = por %p46_p2, %p45_p1 }
   0x9   :  { %p48_p4 = pnand %p47_p3, %p41_p0 }
  0x13   :  { %v39_v2 = vpop.eup %38 }
  0x14   :  { %35 = vpush %v39_v2 }
  0x45   :  { %s36_s11 = spop %35 }
  0x46   :  { %v16_v3 = vstv %s36_s11 }
  0x47   :  { %17 = vst [vmem:[#allocation3] sm:$0xff] %v16_v3  ;;  %18 = vst [vmem:[#allocation3 + $0x8] sm:$0xff] %v16_v3 }
  0x48   :  { %19 = vst [vmem:[#allocation3 + $0x10] sm:$0xff] %v16_v3  ;;  %20 = vst [vmem:[#allocation3 + $0x18] sm:$0xff] %v16_v3 }
  0x49   :  { %51 = shalt.err (!%p48_p4)
}
  0x4a   :  { %30 = dma.vmem_to_hbm [thread:$0]  %s28_s10, 512, %s80_s1, [#allocation4]  }
  0x4b   :  { %60 = dma.done.wait [#allocation4], 512  }
  0x4c   :  { %61 = vsyncadd [#allocation4], 4294966784 }
  0x4d   :  { %34 = vsyncpa [#allocation4], 1 }

</bundles_post_ra>
